<compile_context>
chip_gen: v6e
topology: v6e:2x2x1
jax: 0.10.0
libtpu: 0.0.40
codegen_flags: <defaults>
</compile_context>

<pallas_src>
import functools

import jax
import jax.numpy as jnp
from jax import lax
from jax.experimental import pallas as pl
from jax.experimental.pallas import tpu as pltpu


def _round_up(x, m):
    return ((x + m - 1) // m) * m


def _hidden_pad_granularity(width):
    """128 always works; 256 only when the MXU is 256x256 (v6e/v7x) and the
    width is closer to the next 256 multiple than to the next 128 multiple."""
    try:
        kind = jax.devices()[0].device_kind.lower()
    except Exception:
        return 128
    big_mxu = ("v6" in kind) or ("v7" in kind)
    if big_mxu and width > 128 and (width % 256) > 128:
        return 256
    return 128


def _fused_mlp_kernel(*refs, depth):
    """Whole MLP for one batch tile.

    refs = (x_ref, w0_ref, b0_ref, ..., w{d-1}_ref, b{d-1}_ref, o_ref)
    Weights arrive pre-transposed as (in_features, out_features) bf16 so the
    MXU consumes them directly (contract dim 0 of w, no in-kernel transpose).
    Matmul inputs are bf16, accumulation f32; bias-add / ReLU are f32 (VPU).
    Intermediate activations stay as values (vregs/VMEM), never touch HBM.
    """
    x_ref = refs[0]
    o_ref = refs[-1]
    wb = refs[1:-1]

    h = x_ref[...].astype(jnp.float32)
    for i in range(depth):
        w = wb[2 * i][...]        # (in_f, out_f) bf16
        b = wb[2 * i + 1][...]    # (1, out_f)    f32
        h = lax.dot_general(
            h.astype(jnp.bfloat16), w,
            dimension_numbers=(((1,), (0,)), ((), ())),
            preferred_element_type=jnp.float32,
        )
        h = h + b
        if i < depth - 1:
            # activation_fn constructor arg in the PyTorch module; ReLU here.
            h = jnp.maximum(h, 0.0)
    o_ref[...] = h.astype(o_ref.dtype)


def init_params(key, input_size, depth, width):
    """Deterministic init mirroring the PyTorch __init__ layer shapes.

    Weights kept in PyTorch nn.Linear layout: w (out_features, in_features),
    b (1, out_features). init_fn := scaled normal (deterministic stand-in).
    """
    params = []
    for i in range(depth):
        in_features = input_size if i == 0 else width
        out_features = width if i < depth - 1 else 1
        key, kw, kb = jax.random.split(key, 3)
        w = jax.random.normal(kw, (out_features, in_features), jnp.float32) * (
            1.0 / jnp.sqrt(in_features)
        )
        b = jax.random.normal(kb, (1, out_features), jnp.float32) * 0.01
        params.append((w, b))
    return params


def prepare_params(params, pad_to=None):
    """One-time param prep: transpose to (in, out), pad to lane-dense dims,
    cast weights to bf16 (biases stay f32 for the f32 VPU add).

    Zero-padded weight rows/cols and zero-padded bias leave the math exactly
    unchanged: padded activation columns only ever multiply zero weight rows
    in the next layer, and the final layer's extra output columns are sliced
    off in the wrapper.  ALL layer outputs (including the last, width-1 one)
    are padded so stores and MXU columns are lane-dense.
    """
    depth = len(params)
    if pad_to is None:
        hidden_width = params[0][0].shape[0] if depth > 1 else 1
        pad_to = _hidden_pad_granularity(hidden_width)

    prepared = []
    for i, (w, b) in enumerate(params):
        out_f, in_f = w.shape
        wt = jnp.asarray(w, jnp.float32).T                     # (in_f, out_f)
        out_p = _round_up(out_f, pad_to)
        if i == 0:
            # Layer-0 K: only pad when the input is wide (keeps the toy-size
            # x tile tiny); when padded, x is padded to match in the wrapper.
            in_p = in_f if in_f <= 128 else _round_up(in_f, 128)
        else:
            in_p = _round_up(in_f, pad_to)
        wt = jnp.pad(wt, ((0, in_p - in_f), (0, out_p - out_f)))
        bp = jnp.pad(jnp.asarray(b, jnp.float32).reshape(1, out_f),
                     ((0, 0), (0, out_p - out_f)))
        prepared.append((wt.astype(jnp.bfloat16), bp))
    return prepared


def _pick_batch_tile(batch):
    """Sublane-dense batch tile; big enough to amortize per-step overhead,
    >=2 tiles when possible so v7x megacore sharding has work per core."""
    if batch >= 2048:
        return 512
    if batch >= 512:
        return 256
    if batch >= 256:
        return 128
    if batch >= 128:
        return _round_up((batch + 1) // 2, 8)     # 2 tiles
    return max(8, _round_up(batch, 8))            # single small tile


def fused_mlp_forward(x, prepared_params, *, tb=None, single_buffer_weights=True):
    """Single fused pallas_call for the whole MLP, tiled over batch."""
    batch, in0 = x.shape
    depth = len(prepared_params)
    in0_pad = prepared_params[0][0].shape[0]
    out_pad = prepared_params[-1][0].shape[1]     # final layer padded to 128+

    # Pad x's feature dim to layer-0's (possibly padded) K.
    if in0_pad != in0:
        x = jnp.pad(x, ((0, 0), (0, in0_pad - in0)))

    # Batch tiling: pad the batch up to a multiple of a sublane-dense tile
    # (never collapse to one giant block), slice the padding off afterwards.
    if tb is None:
        tb = _pick_batch_tile(batch)
    tb = max(8, _round_up(tb, 8))
    batch_pad = _round_up(batch, tb)
    if batch_pad != batch:
        x = jnp.pad(x, ((0, batch_pad - batch), (0, 0)))
    grid = (batch_pad // tb,)

    weight_mode = pl.Buffered(1) if single_buffer_weights else None

    in_specs = [pl.BlockSpec((tb, in0_pad), lambda i: (i, 0))]
    flat_params = []
    weight_bytes = 0
    max_width = out_pad
    for (w, b) in prepared_params:
        in_f, out_f = w.shape
        max_width = max(max_width, out_f)
        # Weights/bias: same block every grid step -> resident in VMEM; a
        # second pipeline buffer would be pure waste for a constant index_map.
        in_specs.append(pl.BlockSpec((in_f, out_f), lambda i: (0, 0),
                                     pipeline_mode=weight_mode))
        in_specs.append(pl.BlockSpec((1, out_f), lambda i: (0, 0),
                                     pipeline_mode=weight_mode))
        flat_params += [w, b]
        weight_bytes += w.size * w.dtype.itemsize + b.size * b.dtype.itemsize

    # Explicit VMEM budget: resident weights (+1 extra copy if double
    # buffered) + double-buffered x/out tiles + intermediate h + headroom.
    wbuf = 1 if single_buffer_weights else 2
    vmem_needed = (
        wbuf * weight_bytes
        + 2 * tb * in0_pad * x.dtype.itemsize
        + 2 * tb * out_pad * 4
        + 2 * tb * max_width * 4
        + (4 << 20)
    )
    vmem_limit = int(min(max(vmem_needed, 32 << 20), 64 << 20))

    flops = sum(2 * batch_pad * w.shape[0] * w.shape[1]
                for w, _ in prepared_params)
    bytes_accessed = (
        x.size * x.dtype.itemsize
        + sum(int(a.size) * a.dtype.itemsize for a in flat_params)
        + batch_pad * out_pad * 4
    )

    kernel = functools.partial(_fused_mlp_kernel, depth=depth)
    out = pl.pallas_call(
        kernel,
        out_shape=jax.ShapeDtypeStruct((batch_pad, out_pad), jnp.float32),
        grid=grid,
        in_specs=in_specs,
        out_specs=pl.BlockSpec((tb, out_pad), lambda i: (i, 0)),
        compiler_params=pltpu.CompilerParams(
            # Batch tiles are independent -> megacore sharding on v7x.
            dimension_semantics=("parallel",),
            vmem_limit_bytes=vmem_limit,
        ),
        cost_estimate=pl.CostEstimate(
            flops=flops, transcendentals=0, bytes_accessed=int(bytes_accessed)
        ),
    )(x, *flat_params)

    # Drop batch padding and the padded output columns, then match torch
    # `.squeeze()` on the (batch, 1) result.
    return jnp.squeeze(out[:batch, :1])


def neural_network_reference(x, params):
    """Pure-JAX f32 reference (PyTorch-layout params) for correctness check."""
    h = x
    n = len(params)
    for i, (w, b) in enumerate(params):
        h = h @ w.T + b
        if i < n - 1:
            h = jnp.maximum(h, 0.0)
    return jnp.squeeze(h)


if __name__ == "__main__":
    input_size = 16
    depth = 3
    width = 32
    batch = 8

    key = jax.random.PRNGKey(0)
    key, kx = jax.random.split(key)
    x = jax.random.normal(kx, (batch, input_size), jnp.float32)
    params = init_params(key, input_size, depth, width)

    # One-time host-side prep (transpose + lane-dense padding + bf16), then
    # one fused Pallas kernel for the whole forward pass.
    prepared = prepare_params(params)

    try:
        fwd = jax.jit(functools.partial(fused_mlp_forward,
                                        single_buffer_weights=True))
        out = jax.block_until_ready(fwd(x, prepared))
    except Exception:
        # Fallback if this generation's lowering rejects Buffered(1) on the
        # constant-index weight specs; everything else is unchanged.
        fwd = jax.jit(functools.partial(fused_mlp_forward,
                                        single_buffer_weights=False))
        out = jax.block_until_ready(fwd(x, prepared))

    ref = neural_network_reference(x, params)
    assert out.shape == (batch,), out.shape
    # bf16 matmul inputs (f32 accumulation) -> loosened tolerance vs f32 ref.
    assert jnp.allclose(out, ref, atol=5e-2, rtol=5e-2), (out, ref)

    # TODO(synk): activation_fn / init_fn are constructor args in the PyTorch
    # module; fixed here to ReLU and a deterministic scaled-normal init.
    print("KERNEL_OK")
</pallas_src>

<mosaic_0001>
module attributes {stable_mosaic.version = 11 : i64} {
  func.func @_fused_mlp_kernel(%arg0: i32, %arg1: memref<8x16xf32, #tpu.memory_space<vmem>>, %arg2: memref<16x128xbf16, #tpu.memory_space<vmem>>, %arg3: memref<1x128xf32, #tpu.memory_space<vmem>>, %arg4: memref<128x128xbf16, #tpu.memory_space<vmem>>, %arg5: memref<1x128xf32, #tpu.memory_space<vmem>>, %arg6: memref<128x128xbf16, #tpu.memory_space<vmem>>, %arg7: memref<1x128xf32, #tpu.memory_space<vmem>>, %arg8: memref<8x128xf32, #tpu.memory_space<vmem>>) attributes {dimension_semantics = [#tpu.dimension_semantics<parallel>], iteration_bounds = array<i64: 1>, scalar_prefetch = 0 : i64, scratch_operands = 0 : i64, tpu.core_type = #tpu.core_type<tc>, window_params = [{transform_indices = @transform_0, window_bounds = array<i64: 8, 16>}, {pipeline_mode = #tpu.pipeline_mode<synchronous>, transform_indices = @transform_1, window_bounds = array<i64: 16, 128>}, {pipeline_mode = #tpu.pipeline_mode<synchronous>, transform_indices = @transform_2, window_bounds = array<i64: 1, 128>}, {pipeline_mode = #tpu.pipeline_mode<synchronous>, transform_indices = @transform_3, window_bounds = array<i64: 128, 128>}, {pipeline_mode = #tpu.pipeline_mode<synchronous>, transform_indices = @transform_4, window_bounds = array<i64: 1, 128>}, {pipeline_mode = #tpu.pipeline_mode<synchronous>, transform_indices = @transform_5, window_bounds = array<i64: 128, 128>}, {pipeline_mode = #tpu.pipeline_mode<synchronous>, transform_indices = @transform_6, window_bounds = array<i64: 1, 128>}, {transform_indices = @transform_7, window_bounds = array<i64: 8, 128>}]} {
    %c0 = arith.constant 0 : index
    %c0_0 = arith.constant 0 : index
    %0 = vector.load %arg1[%c0, %c0_0] : memref<8x16xf32, #tpu.memory_space<vmem>>, vector<8x16xf32>
    %c0_1 = arith.constant 0 : index
    %c0_2 = arith.constant 0 : index
    %1 = vector.load %arg2[%c0_1, %c0_2] : memref<16x128xbf16, #tpu.memory_space<vmem>>, vector<16x128xbf16>
    %c0_3 = arith.constant 0 : index
    %c0_4 = arith.constant 0 : index
    %2 = vector.load %arg3[%c0_3, %c0_4] : memref<1x128xf32, #tpu.memory_space<vmem>>, vector<1x128xf32>
    %3 = arith.truncf %0 : vector<8x16xf32> to vector<8x16xbf16>
    %cst = arith.constant dense<0.000000e+00> : vector<8x128xf32>
    %4 = tpu.matmul %3, %1, %cst {dimension_numbers = #tpu.dot_dimension_numbers<[1], [0], [0], [1], [0, 0, 1, 1], [], []>} : vector<8x16xbf16>, vector<16x128xbf16>, vector<8x128xf32> -> vector<8x128xf32>
    %5 = vector.broadcast %2 : vector<1x128xf32> to vector<8x128xf32>
    %6 = arith.addf %4, %5 : vector<8x128xf32>
    %cst_5 = arith.constant 0.000000e+00 : f32
    %7 = vector.broadcast %cst_5 : f32 to vector<8x128xf32>
    %8 = arith.maximumf %6, %7 : vector<8x128xf32>
    %c0_6 = arith.constant 0 : index
    %c0_7 = arith.constant 0 : index
    %9 = vector.load %arg4[%c0_6, %c0_7] : memref<128x128xbf16, #tpu.memory_space<vmem>>, vector<128x128xbf16>
    %c0_8 = arith.constant 0 : index
    %c0_9 = arith.constant 0 : index
    %10 = vector.load %arg5[%c0_8, %c0_9] : memref<1x128xf32, #tpu.memory_space<vmem>>, vector<1x128xf32>
    %11 = arith.truncf %8 : vector<8x128xf32> to vector<8x128xbf16>
    %cst_10 = arith.constant dense<0.000000e+00> : vector<8x128xf32>
    %12 = tpu.matmul %11, %9, %cst_10 {dimension_numbers = #tpu.dot_dimension_numbers<[1], [0], [0], [1], [0, 0, 1, 1], [], []>} : vector<8x128xbf16>, vector<128x128xbf16>, vector<8x128xf32> -> vector<8x128xf32>
    %13 = vector.broadcast %10 : vector<1x128xf32> to vector<8x128xf32>
    %14 = arith.addf %12, %13 : vector<8x128xf32>
    %cst_11 = arith.constant 0.000000e+00 : f32
    %15 = vector.broadcast %cst_11 : f32 to vector<8x128xf32>
    %16 = arith.maximumf %14, %15 : vector<8x128xf32>
    %c0_12 = arith.constant 0 : index
    %c0_13 = arith.constant 0 : index
    %17 = vector.load %arg6[%c0_12, %c0_13] : memref<128x128xbf16, #tpu.memory_space<vmem>>, vector<128x128xbf16>
    %c0_14 = arith.constant 0 : index
    %c0_15 = arith.constant 0 : index
    %18 = vector.load %arg7[%c0_14, %c0_15] : memref<1x128xf32, #tpu.memory_space<vmem>>, vector<1x128xf32>
    %19 = arith.truncf %16 : vector<8x128xf32> to vector<8x128xbf16>
    %cst_16 = arith.constant dense<0.000000e+00> : vector<8x128xf32>
    %20 = tpu.matmul %19, %17, %cst_16 {dimension_numbers = #tpu.dot_dimension_numbers<[1], [0], [0], [1], [0, 0, 1, 1], [], []>} : vector<8x128xbf16>, vector<128x128xbf16>, vector<8x128xf32> -> vector<8x128xf32>
    %21 = vector.broadcast %18 : vector<1x128xf32> to vector<8x128xf32>
    %22 = arith.addf %20, %21 : vector<8x128xf32>
    %c0_17 = arith.constant 0 : index
    %c0_18 = arith.constant 0 : index
    %23 = vector.load %arg8[%c0_17, %c0_18] : memref<8x128xf32, #tpu.memory_space<vmem>>, vector<8x128xf32>
    tpu.vector_store %arg8[%c0_17, %c0_18], %22 {strides = array<i32>} : memref<8x128xf32, #tpu.memory_space<vmem>>, vector<8x128xf32>,
    return
  }
  func.func @transform_0(%arg0: i32) -> (i32, i32) {
    %c0_i32 = arith.constant 0 : i32
    %c0_i32_0 = arith.constant 0 : i32
    return %arg0, %c0_i32 : i32, i32
  }
  func.func @transform_1(%arg0: i32) -> (i32, i32) {
    %c0_i32 = arith.constant 0 : i32
    %c0_i32_0 = arith.constant 0 : i32
    %c0_i32_1 = arith.constant 0 : i32
    return %c0_i32, %c0_i32_0 : i32, i32
  }
  func.func @transform_2(%arg0: i32) -> (i32, i32) {
    %c0_i32 = arith.constant 0 : i32
    %c0_i32_0 = arith.constant 0 : i32
    %c0_i32_1 = arith.constant 0 : i32
    return %c0_i32, %c0_i32_0 : i32, i32
  }
  func.func @transform_3(%arg0: i32) -> (i32, i32) {
    %c0_i32 = arith.constant 0 : i32
    %c0_i32_0 = arith.constant 0 : i32
    %c0_i32_1 = arith.constant 0 : i32
    return %c0_i32, %c0_i32_0 : i32, i32
  }
  func.func @transform_4(%arg0: i32) -> (i32, i32) {
    %c0_i32 = arith.constant 0 : i32
    %c0_i32_0 = arith.constant 0 : i32
    %c0_i32_1 = arith.constant 0 : i32
    return %c0_i32, %c0_i32_0 : i32, i32
  }
  func.func @transform_5(%arg0: i32) -> (i32, i32) {
    %c0_i32 = arith.constant 0 : i32
    %c0_i32_0 = arith.constant 0 : i32
    %c0_i32_1 = arith.constant 0 : i32
    return %c0_i32, %c0_i32_0 : i32, i32
  }
  func.func @transform_6(%arg0: i32) -> (i32, i32) {
    %c0_i32 = arith.constant 0 : i32
    %c0_i32_0 = arith.constant 0 : i32
    %c0_i32_1 = arith.constant 0 : i32
    return %c0_i32, %c0_i32_0 : i32, i32
  }
  func.func @transform_7(%arg0: i32) -> (i32, i32) {
    %c0_i32 = arith.constant 0 : i32
    %c0_i32_0 = arith.constant 0 : i32
    return %arg0, %c0_i32 : i32, i32
  }
}

module attributes {stable_mosaic.version = 11 : i64} {
  func.func @_fused_mlp_kernel(%arg0: i32, %arg1: memref<8x16xf32, #tpu.memory_space<vmem>>, %arg2: memref<16x128xbf16, #tpu.memory_space<vmem>>, %arg3: memref<1x128xf32, #tpu.memory_space<vmem>>, %arg4: memref<128x128xbf16, #tpu.memory_space<vmem>>, %arg5: memref<1x128xf32, #tpu.memory_space<vmem>>, %arg6: memref<128x128xbf16, #tpu.memory_space<vmem>>, %arg7: memref<1x128xf32, #tpu.memory_space<vmem>>, %arg8: memref<8x128xf32, #tpu.memory_space<vmem>>) attributes {dimension_semantics = [#tpu.dimension_semantics<parallel>], iteration_bounds = array<i64: 1>, scalar_prefetch = 0 : i64, scratch_operands = 0 : i64, tpu.core_type = #tpu.core_type<tc>, window_params = [{transform_indices = @transform_0, window_bounds = array<i64: 8, 16>}, {pipeline_mode = #tpu.pipeline_mode<synchronous>, transform_indices = @transform_1, window_bounds = array<i64: 16, 128>}, {pipeline_mode = #tpu.pipeline_mode<synchronous>, transform_indices = @transform_2, window_bounds = array<i64: 1, 128>}, {pipeline_mode = #tpu.pipeline_mode<synchronous>, transform_indices = @transform_3, window_bounds = array<i64: 128, 128>}, {pipeline_mode = #tpu.pipeline_mode<synchronous>, transform_indices = @transform_4, window_bounds = array<i64: 1, 128>}, {pipeline_mode = #tpu.pipeline_mode<synchronous>, transform_indices = @transform_5, window_bounds = array<i64: 128, 128>}, {pipeline_mode = #tpu.pipeline_mode<synchronous>, transform_indices = @transform_6, window_bounds = array<i64: 1, 128>}, {transform_indices = @transform_7, window_bounds = array<i64: 8, 128>}]} {
    %c0 = arith.constant 0 : index
    %c0_0 = arith.constant 0 : index
    %0 = vector.load %arg1[%c0, %c0_0] : memref<8x16xf32, #tpu.memory_space<vmem>>, vector<8x16xf32>
    %c0_1 = arith.constant 0 : index
    %c0_2 = arith.constant 0 : index
    %1 = vector.load %arg2[%c0_1, %c0_2] : memref<16x128xbf16, #tpu.memory_space<vmem>>, vector<16x128xbf16>
    %c0_3 = arith.constant 0 : index
    %c0_4 = arith.constant 0 : index
    %2 = vector.load %arg3[%c0_3, %c0_4] : memref<1x128xf32, #tpu.memory_space<vmem>>, vector<1x128xf32>
    %3 = arith.truncf %0 : vector<8x16xf32> to vector<8x16xbf16>
    %cst = arith.constant dense<0.000000e+00> : vector<8x128xf32>
    %4 = tpu.matmul %3, %1, %cst {dimension_numbers = #tpu.dot_dimension_numbers<[1], [0], [0], [1], [0, 0, 1, 1], [], []>} : vector<8x16xbf16>, vector<16x128xbf16>, vector<8x128xf32> -> vector<8x128xf32>
    %5 = vector.broadcast %2 : vector<1x128xf32> to vector<8x128xf32>
    %6 = arith.addf %4, %5 : vector<8x128xf32>
    %cst_5 = arith.constant 0.000000e+00 : f32
    %7 = vector.broadcast %cst_5 : f32 to vector<8x128xf32>
    %8 = arith.maximumf %6, %7 : vector<8x128xf32>
    %c0_6 = arith.constant 0 : index
    %c0_7 = arith.constant 0 : index
    %9 = vector.load %arg4[%c0_6, %c0_7] : memref<128x128xbf16, #tpu.memory_space<vmem>>, vector<128x128xbf16>
    %c0_8 = arith.constant 0 : index
    %c0_9 = arith.constant 0 : index
    %10 = vector.load %arg5[%c0_8, %c0_9] : memref<1x128xf32, #tpu.memory_space<vmem>>, vector<1x128xf32>
    %11 = arith.truncf %8 : vector<8x128xf32> to vector<8x128xbf16>
    %cst_10 = arith.constant dense<0.000000e+00> : vector<8x128xf32>
    %12 = tpu.matmul %11, %9, %cst_10 {dimension_numbers = #tpu.dot_dimension_numbers<[1], [0], [0], [1], [0, 0, 1, 1], [], []>} : vector<8x128xbf16>, vector<128x128xbf16>, vector<8x128xf32> -> vector<8x128xf32>
    %13 = vector.broadcast %10 : vector<1x128xf32> to vector<8x128xf32>
    %14 = arith.addf %12, %13 : vector<8x128xf32>
    %cst_11 = arith.constant 0.000000e+00 : f32
    %15 = vector.broadcast %cst_11 : f32 to vector<8x128xf32>
    %16 = arith.maximumf %14, %15 : vector<8x128xf32>
    %c0_12 = arith.constant 0 : index
    %c0_13 = arith.constant 0 : index
    %17 = vector.load %arg6[%c0_12, %c0_13] : memref<128x128xbf16, #tpu.memory_space<vmem>>, vector<128x128xbf16>
    %c0_14 = arith.constant 0 : index
    %c0_15 = arith.constant 0 : index
    %18 = vector.load %arg7[%c0_14, %c0_15] : memref<1x128xf32, #tpu.memory_space<vmem>>, vector<1x128xf32>
    %19 = arith.truncf %16 : vector<8x128xf32> to vector<8x128xbf16>
    %cst_16 = arith.constant dense<0.000000e+00> : vector<8x128xf32>
    %20 = tpu.matmul %19, %17, %cst_16 {dimension_numbers = #tpu.dot_dimension_numbers<[1], [0], [0], [1], [0, 0, 1, 1], [], []>} : vector<8x128xbf16>, vector<128x128xbf16>, vector<8x128xf32> -> vector<8x128xf32>
    %21 = vector.broadcast %18 : vector<1x128xf32> to vector<8x128xf32>
    %22 = arith.addf %20, %21 : vector<8x128xf32>
    %c0_17 = arith.constant 0 : index
    %c0_18 = arith.constant 0 : index
    %23 = vector.load %arg8[%c0_17, %c0_18] : memref<8x128xf32, #tpu.memory_space<vmem>>, vector<8x128xf32>
    tpu.vector_store %arg8[%c0_17, %c0_18], %22 {strides = array<i32>} : memref<8x128xf32, #tpu.memory_space<vmem>>, vector<8x128xf32>,
    return
  }
  func.func @transform_0(%arg0: i32) -> (i32, i32) {
    %c0_i32 = arith.constant 0 : i32
    %c0_i32_0 = arith.constant 0 : i32
    return %arg0, %c0_i32 : i32, i32
  }
  func.func @transform_1(%arg0: i32) -> (i32, i32) {
    %c0_i32 = arith.constant 0 : i32
    %c0_i32_0 = arith.constant 0 : i32
    %c0_i32_1 = arith.constant 0 : i32
    return %c0_i32, %c0_i32_0 : i32, i32
  }
  func.func @transform_2(%arg0: i32) -> (i32, i32) {
    %c0_i32 = arith.constant 0 : i32
    %c0_i32_0 = arith.constant 0 : i32
    %c0_i32_1 = arith.constant 0 : i32
    return %c0_i32, %c0_i32_0 : i32, i32
  }
  func.func @transform_3(%arg0: i32) -> (i32, i32) {
    %c0_i32 = arith.constant 0 : i32
    %c0_i32_0 = arith.constant 0 : i32
    %c0_i32_1 = arith.constant 0 : i32
    return %c0_i32, %c0_i32_0 : i32, i32
  }
  func.func @transform_4(%arg0: i32) -> (i32, i32) {
    %c0_i32 = arith.constant 0 : i32
    %c0_i32_0 = arith.constant 0 : i32
    %c0_i32_1 = arith.constant 0 : i32
    return %c0_i32, %c0_i32_0 : i32, i32
  }
  func.func @transform_5(%arg0: i32) -> (i32, i32) {
    %c0_i32 = arith.constant 0 : i32
    %c0_i32_0 = arith.constant 0 : i32
    %c0_i32_1 = arith.constant 0 : i32
    return %c0_i32, %c0_i32_0 : i32, i32
  }
  func.func @transform_6(%arg0: i32) -> (i32, i32) {
    %c0_i32 = arith.constant 0 : i32
    %c0_i32_0 = arith.constant 0 : i32
    %c0_i32_1 = arith.constant 0 : i32
    return %c0_i32, %c0_i32_0 : i32, i32
  }
  func.func @transform_7(%arg0: i32) -> (i32, i32) {
    %c0_i32 = arith.constant 0 : i32
    %c0_i32_0 = arith.constant 0 : i32
    return %arg0, %c0_i32 : i32, i32
  }
}

</mosaic_0001>

<bundles_post_ra>
// kernel: fused_mlp_forward.1
= control target key start
LH: loop header
LB: loop body
LE: loop exit
PB: predicated region body
PF: predicated region fallthrough
CT: control target
= control target key end

     0   :  { %12 = vsyncpa [#allocation3], 0  ;;  %s674_s0 = inlined_call_operand.hbm [shape: f32[8,16], index: 0, kind: input, shape index: {}]   ;;  %s675_s1 = inlined_call_operand.hbm [shape: bf16[16,128], index: 1, kind: input, shape index: {}]   ;;  %s676_s2 = inlined_call_operand.vmem [shape: f32[1,128], index: 2, kind: input, shape index: {}]   ;;  %s677_s3 = inlined_call_operand.hbm [shape: bf16[128,128], index: 3, kind: input, shape index: {}]   ;;  %s678_s4 = inlined_call_operand.vmem [shape: f32[1,128], index: 4, kind: input, shape index: {}]   ;;  %s679_s5 = inlined_call_operand.hbm [shape: bf16[128,128], index: 5, kind: input, shape index: {}]   ;;  %s680_s6 = inlined_call_operand.vmem [shape: f32[1,128], index: 6, kind: input, shape index: {}]   ;;  %s681_s7 = inlined_call_operand.vmem [shape: f32[8,128], index: 7, kind: output, shape index: {}]  }
   0x1   :  { %13 = vsyncpa [#allocation5], 0 }
   0x2   :  { %14 = vsyncpa [#allocation8], 0  ;;  %s573_s24 = smov [#allocation4]  }
   0x3   :  { %s30_s25 = sshll.u32 %s573_s24, 4  ;;  %s31_s25 = int_to_ptr.vmem [resolvable:$true] %s30_s25 }
   0x4   :  { %s495_s26 = scalar_lea.vmem %s31_s25, 128  ;;  %p500_p1 = scmp.lt.s32.totalorder %s31_s25, %s31_s25 }
   0x5   :  { %p496_p0 = scmp.ne.s32.totalorder %s31_s25, %s495_s26  ;;  %p501_p2 = scmp.lt.s32.totalorder %s495_s26, %s495_s26 }
   0x7   :  { %p502_p3 = por %p501_p2, %p500_p1 }
   0x9   :  { %p503_p4 = pnand %p502_p3, %p496_p0 }
   0xb   :  { %506 = shalt.err (!%p503_p4)
}
   0xc   :  { %s574_s27 = smov 64   ;;  %s575_s28 = smov 4  }
   0xd   :  { %36 = dma.hbm_to_vmem [thread:$0]  %s675_s1, 128, %s31_s25, [#allocation5], %s574_s27, %s574_s27, %s575_s28  }
   0xe   :  { %s576_s8 = smov [#allocation2]   ;;  %s577_s10 = smov [#allocation6]  }
   0xf   :  { %s21_s9 = sshll.u32 %s576_s8, 4  ;;  %s44_s11 = sshll.u32 %s577_s10, 4  ;;  %s22_s9 = int_to_ptr.vmem [resolvable:$true] %s21_s9  ;;  %s45_s11 = int_to_ptr.vmem [resolvable:$true] %s44_s11 }
  0x10   :  { %s515_s12 = scalar_lea.vmem %s22_s9, 128  ;;  %p520_p6 = scmp.lt.s32.totalorder %s22_s9, %s22_s9 }
  0x11   :  { %p516_p5 = scmp.ne.s32.totalorder %s22_s9, %s515_s12  ;;  %p521_p7 = scmp.lt.s32.totalorder %s515_s12, %s515_s12 }
  0x13   :  { %p522_p8 = por %p521_p7, %p520_p6 }
  0x15   :  { %p523_p9 = pnand %p522_p8, %p516_p5 }
  0x17   :  { %526 = shalt.err (!%p523_p9)
}
  0x18   :  { %24 = dma.hbm_to_vmem [thread:$0]  %s674_s0, 128, %s22_s9, [#allocation3]  }
  0x19   :  { %s535_s15 = scalar_lea.vmem %s45_s11, 1024  ;;  %p540_p11 = scmp.lt.s32.totalorder %s45_s11, %s45_s11 }
  0x1a   :  { %p536_p10 = scmp.ne.s32.totalorder %s45_s11, %s535_s15  ;;  %p541_p12 = scmp.lt.s32.totalorder %s535_s15, %s535_s15 }
  0x1c   :  { %p542_p13 = por %p541_p12, %p540_p11 }
  0x1e   :  { %p543_p0 = pnand %p542_p13, %p536_p10 }
  0x20   :  { %546 = shalt.err (!%p543_p0)
}
  0x21   :  { %50 = dma.hbm_to_vmem [thread:$0]  %s677_s3, 1024, %s45_s11, [#allocation5], %s574_s27, %s574_s27, %s575_s28  }
  0x22   :  { %s578_s17 = smov [#allocation7]  }
  0x23   :  { %s58_s18 = sshll.u32 %s578_s17, 4  ;;  %s59_s18 = int_to_ptr.vmem [resolvable:$true] %s58_s18 }
  0x24   :  { %s555_s19 = scalar_lea.vmem %s59_s18, 1024  ;;  %p560_p2 = scmp.lt.s32.totalorder %s59_s18, %s59_s18 }
  0x25   :  { %p556_p1 = scmp.ne.s32.totalorder %s59_s18, %s555_s19  ;;  %p561_p3 = scmp.lt.s32.totalorder %s555_s19, %s555_s19 }
  0x27   :  { %p562_p4 = por %p561_p3, %p560_p2 }
  0x29   :  { %p563_p5 = pnand %p562_p4, %p556_p1 }
  0x2b   :  { %566 = shalt.err (!%p563_p5)
}
  0x2c   :  { %64 = dma.hbm_to_vmem [thread:$0]  %s679_s5, 1024, %s59_s18, [#allocation8], %s574_s27, %s574_s27, %s575_s28  }
  0x2d   :  { %567 = dma.done.wait [#allocation3], 128  }
  0x2e   :  { %568 = vsyncadd [#allocation3], 4294967168 }
  0x2f   :  { %569 = dma.done.wait [#allocation5], 1152  }
  0x30   :  { %570 = vsyncadd [#allocation5], 4294966144 }
  0x31   :  { %571 = dma.done.wait [#allocation8], 1024  }
  0x32   :  { %572 = vsyncadd [#allocation8], 4294966272  ;;  %v579_v0 = vmov 0.0   ;;  %vm580_vm0 = vmmov 0   ;;  %v470_v1 = vld [vmem:[#allocation4] sm:$0xff]   ;;  %v80_v2 = vld [vmem:[#allocation2] sm:$0xff] }
  0x33   :  { %416 = vmatprep.subr.bf16.mxu0 %v579_v0  ;;  %418 = vmatprep.mubr.msk.bf16.mxu0 %vm580_vm0, %v579_v0  ;;  %v84_v3 = vpack.c.bf16 %v80_v2, %v80_v2  ;;  %vm97_vm1 = vcmask 130048   ;;  %v471_v4 = vld [vmem:[#allocation6 + $0x38] sm:$0xff]   ;;  %v472_v5 = vld [vmem:[#allocation6 + $0x30] sm:$0xff]   ;;  %v473_v6 = vld [vmem:[#allocation6 + $0x28] sm:$0xff]  }
  0x34   :  { %422 = vmatprep.subr.bf16.mxu1 %v579_v0  ;;  %438 = vmatprep.mubr.msk.bf16.mxu1 %vm580_vm0, %v579_v0  ;;  %v474_v7 = vld [vmem:[#allocation6 + $0x20] sm:$0xff]   ;;  %v475_v8 = vld [vmem:[#allocation6 + $0x18] sm:$0xff]   ;;  %v476_v9 = vld [vmem:[#allocation6 + $0x10] sm:$0xff]  }
  0x35   :  { %417 = vmatpush3.bf16.msra.mxu0 %v470_v1  ;;  %423 = vmatpush3.bf16.msra.mxu1 %v471_v4  ;;  %v477_v10 = vld [vmem:[#allocation6 + $0x8] sm:$0xff]   ;;  %v478_v11 = vld [vmem:[#allocation6] sm:$0xff]   ;;  %v479_v12 = vld [vmem:[#allocation7 + $0x38] sm:$0xff]  }
  0x36   :  { %442 = vmatprep.subr.bf16.mxu0 %v579_v0  ;;  %424 = vmatprep.subr.bf16.mxu1 %v579_v0  ;;  %v480_v13 = vld [vmem:[#allocation7 + $0x30] sm:$0xff]   ;;  %v481_v14 = vld [vmem:[#allocation7 + $0x28] sm:$0xff]   ;;  %v482_v15 = vld [vmem:[#allocation7 + $0x20] sm:$0xff]  }
  0x37   :  { %v483_v16 = vld [vmem:[#allocation7 + $0x18] sm:$0xff]   ;;  %v484_v17 = vld [vmem:[#allocation7 + $0x10] sm:$0xff]   ;;  %v485_v26 = vld [vmem:[#allocation7 + $0x8] sm:$0xff]  }
  0x38   :  { %419 = vmatmul.mubr.msk.bf16.vlgmr.msra.gmra.mxu0 %vm97_vm1, %v84_v3  ;;  %v375_v18 = vld [vmem:[%s676_s2] ss:$0 sm:$0xff]  ;;  %v486_v27 = vld [vmem:[#allocation7] sm:$0xff]  }
  0x39   :  { %458 = vmatprep.mubr.msk.bf16.mxu0 %vm580_vm0, %v579_v0  ;;  %425 = vmatpush3.bf16.msra.mxu1 %v472_v5  ;;  %v378_v28 = vld [vmem:[%s678_s4] ss:$0 sm:$0xff] }
  0x3a   :  { %426 = vmatprep.subr.bf16.mxu1 %v579_v0  ;;  %443 = vmatpush3.bf16.msra.mxu0 %v479_v12  ;;  %v387_v36 = vld [vmem:[%s680_s6] ss:$0 sm:$0xff] }
  0x3b   :  { %444 = vmatprep.subr.bf16.mxu0 %v579_v0 }
  0x3d   :  { %427 = vmatpush3.bf16.msra.mxu1 %v473_v6 }
  0x3e   :  { %428 = vmatprep.subr.bf16.mxu1 %v579_v0  ;;  %445 = vmatpush3.bf16.msra.mxu0 %v480_v13 }
  0x3f   :  { %446 = vmatprep.subr.bf16.mxu0 %v579_v0 }
  0x41   :  { %429 = vmatpush3.bf16.msra.mxu1 %v474_v7 }
  0x42   :  { %430 = vmatprep.subr.bf16.mxu1 %v579_v0  ;;  %447 = vmatpush3.bf16.msra.mxu0 %v481_v14 }
  0x43   :  { %448 = vmatprep.subr.bf16.mxu0 %v579_v0 }
  0x45   :  { %431 = vmatpush3.bf16.msra.mxu1 %v475_v8 }
  0x46   :  { %432 = vmatprep.subr.bf16.mxu1 %v579_v0  ;;  %449 = vmatpush3.bf16.msra.mxu0 %v482_v15 }
  0x47   :  { %450 = vmatprep.subr.bf16.mxu0 %v579_v0 }
  0x49   :  { %433 = vmatpush3.bf16.msra.mxu1 %v476_v9 }
  0x4a   :  { %434 = vmatprep.subr.bf16.mxu1 %v579_v0  ;;  %451 = vmatpush3.bf16.msra.mxu0 %v483_v16 }
  0x4b   :  { %452 = vmatprep.subr.bf16.mxu0 %v579_v0 }
  0x4d   :  { %435 = vmatpush3.bf16.msra.mxu1 %v477_v10 }
  0x4e   :  { %436 = vmatprep.subr.bf16.mxu1 %v579_v0  ;;  %453 = vmatpush3.bf16.msra.mxu0 %v484_v17 }
  0x4f   :  { %454 = vmatprep.subr.bf16.mxu0 %v579_v0 }
  0x51   :  { %437 = vmatpush3.bf16.msra.mxu1 %v478_v11 }
  0x52   :  { %455 = vmatpush3.bf16.msra.mxu0 %v485_v26 }
  0x53   :  { %456 = vmatprep.subr.bf16.mxu0 %v579_v0 }
  0x56   :  { %457 = vmatpush3.bf16.msra.mxu0 %v486_v27 }
  0xf8   :  { %v135_v19 = vpop.f32.mrf.mxu0 }
  0xf9   :  { %v136_v20 = vadd.f32 %v375_v18, %v135_v19 }
  0xfa   :  { %v420_v21 = vpop.f32.mrf.mxu0 }
  0xfb   :  { %v141_v22 = vmax.f32 %v136_v20, 0.0 }
  0xfc   :  { %v138_v23 = vpop.f32.mrf.mxu0 }
  0xfd   :  { %v159_v24 = vpack.c.bf16 %v141_v22, %v141_v22 }
  0xfe   :  { %v421_v25 = vpop.f32.mrf.mxu0 }
  0xff   :  { %439 = vmatmul.mubr.bf16.vlgmr.msra.gmra.mxu1 %v159_v24 }
 0x1bf   :  { %v248_v29 = vpop.f32.mrf.mxu1 }
 0x1c0   :  { %v249_v30 = vadd.f32 %v378_v28, %v248_v29 }
 0x1c1   :  { %v440_v31 = vpop.f32.mrf.mxu1 }
 0x1c2   :  { %v254_v32 = vmax.f32 %v249_v30, 0.0 }
 0x1c3   :  { %v251_v33 = vpop.f32.mrf.mxu1 }
 0x1c4   :  { %v272_v34 = vpack.c.bf16 %v254_v32, %v254_v32 }
 0x1c5   :  { %v441_v35 = vpop.f32.mrf.mxu1 }
 0x1c6   :  { %459 = vmatmul.mubr.bf16.vlgmr.msra.gmra.mxu0 %v272_v34 }
 0x286   :  { %v361_v37 = vpop.f32.mrf.mxu0 }
 0x287   :  { %v362_v38 = vadd.f32 %v387_v36, %v361_v37 }
 0x288   :  { %v460_v39 = vpop.f32.mrf.mxu0 }
 0x289   :  { %367 = vst [vmem:[%s681_s7] sm:$0xff] %v362_v38 }
 0x28a   :  { %v364_v40 = vpop.f32.mrf.mxu0 }
 0x28c   :  { %v461_v41 = vpop.f32.mrf.mxu0 }
 0x28d   :  { %372 = vsyncpa [#allocation3], 1 }
 0x28e   :  { %373 = vsyncpa [#allocation5], 1 }
 0x28f   :  { %374 = vsyncpa [#allocation8], 1 }

// kernel: fused_mlp_forward.1
= control target key start
LH: loop header
LB: loop body
LE: loop exit
PB: predicated region body
PF: predicated region fallthrough
CT: control target
= control target key end

     0   :  { %12 = vsyncpa [#allocation3], 0  ;;  %s674_s0 = inlined_call_operand.hbm [shape: f32[8,16], index: 0, kind: input, shape index: {}]   ;;  %s675_s1 = inlined_call_operand.hbm [shape: bf16[16,128], index: 1, kind: input, shape index: {}]   ;;  %s676_s2 = inlined_call_operand.vmem [shape: f32[1,128], index: 2, kind: input, shape index: {}]   ;;  %s677_s3 = inlined_call_operand.hbm [shape: bf16[128,128], index: 3, kind: input, shape index: {}]   ;;  %s678_s4 = inlined_call_operand.vmem [shape: f32[1,128], index: 4, kind: input, shape index: {}]   ;;  %s679_s5 = inlined_call_operand.hbm [shape: bf16[128,128], index: 5, kind: input, shape index: {}]   ;;  %s680_s6 = inlined_call_operand.vmem [shape: f32[1,128], index: 6, kind: input, shape index: {}]   ;;  %s681_s7 = inlined_call_operand.vmem [shape: f32[8,128], index: 7, kind: output, shape index: {}]  }
   0x1   :  { %13 = vsyncpa [#allocation5], 0 }
   0x2   :  { %14 = vsyncpa [#allocation8], 0  ;;  %s573_s24 = smov [#allocation4]  }
   0x3   :  { %s30_s25 = sshll.u32 %s573_s24, 4  ;;  %s31_s25 = int_to_ptr.vmem [resolvable:$true] %s30_s25 }
   0x4   :  { %s495_s26 = scalar_lea.vmem %s31_s25, 128  ;;  %p500_p1 = scmp.lt.s32.totalorder %s31_s25, %s31_s25 }
   0x5   :  { %p496_p0 = scmp.ne.s32.totalorder %s31_s25, %s495_s26  ;;  %p501_p2 = scmp.lt.s32.totalorder %s495_s26, %s495_s26 }
   0x7   :  { %p502_p3 = por %p501_p2, %p500_p1 }
   0x9   :  { %p503_p4 = pnand %p502_p3, %p496_p0 }
   0xb   :  { %506 = shalt.err (!%p503_p4)
}
   0xc   :  { %s574_s27 = smov 64   ;;  %s575_s28 = smov 4  }
   0xd   :  { %36 = dma.hbm_to_vmem [thread:$0]  %s675_s1, 128, %s31_s25, [#allocation5], %s574_s27, %s574_s27, %s575_s28  }
   0xe   :  { %s576_s8 = smov [#allocation2]   ;;  %s577_s10 = smov [#allocation6]  }
   0xf   :  { %s21_s9 = sshll.u32 %s576_s8, 4  ;;  %s44_s11 = sshll.u32 %s577_s10, 4  ;;  %s22_s9 = int_to_ptr.vmem [resolvable:$true] %s21_s9  ;;  %s45_s11 = int_to_ptr.vmem [resolvable:$true] %s44_s11 }
  0x10   :  { %s515_s12 = scalar_lea.vmem %s22_s9, 128  ;;  %p520_p6 = scmp.lt.s32.totalorder %s22_s9, %s22_s9 }
  0x11   :  { %p516_p5 = scmp.ne.s32.totalorder %s22_s9, %s515_s12  ;;  %p521_p7 = scmp.lt.s32.totalorder %s515_s12, %s515_s12 }
  0x13   :  { %p522_p8 = por %p521_p7, %p520_p6 }
  0x15   :  { %p523_p9 = pnand %p522_p8, %p516_p5 }
  0x17   :  { %526 = shalt.err (!%p523_p9)
}
  0x18   :  { %24 = dma.hbm_to_vmem [thread:$0]  %s674_s0, 128, %s22_s9, [#allocation3]  }
  0x19   :  { %s535_s15 = scalar_lea.vmem %s45_s11, 1024  ;;  %p540_p11 = scmp.lt.s32.totalorder %s45_s11, %s45_s11 }
  0x1a   :  { %p536_p10 = scmp.ne.s32.totalorder %s45_s11, %s535_s15  ;;  %p541_p12 = scmp.lt.s32.totalorder %s535_s15, %s535_s15 }
  0x1c   :  { %p542_p13 = por %p541_p12, %p540_p11 }
  0x1e   :  { %p543_p0 = pnand %p542_p13, %p536_p10 }
  0x20   :  { %546 = shalt.err (!%p543_p0)
}
  0x21   :  { %50 = dma.hbm_to_vmem [thread:$0]  %s677_s3, 1024, %s45_s11, [#allocation5], %s574_s27, %s574_s27, %s575_s28  }
  0x22   :  { %s578_s17 = smov [#allocation7]  }
  0x23   :  { %s58_s18 = sshll.u32 %s578_s17, 4  ;;  %s59_s18 = int_to_ptr.vmem [resolvable:$true] %s58_s18 }
  0x24   :  { %s555_s19 = scalar_lea.vmem %s59_s18, 1024  ;;  %p560_p2 = scmp.lt.s32.totalorder %s59_s18, %s59_s18 }
  0x25   :  { %p556_p1 = scmp.ne.s32.totalorder %s59_s18, %s555_s19  ;;  %p561_p3 = scmp.lt.s32.totalorder %s555_s19, %s555_s19 }
  0x27   :  { %p562_p4 = por %p561_p3, %p560_p2 }
  0x29   :  { %p563_p5 = pnand %p562_p4, %p556_p1 }
  0x2b   :  { %566 = shalt.err (!%p563_p5)
}
  0x2c   :  { %64 = dma.hbm_to_vmem [thread:$0]  %s679_s5, 1024, %s59_s18, [#allocation8], %s574_s27, %s574_s27, %s575_s28  }
  0x2d   :  { %567 = dma.done.wait [#allocation3], 128  }
  0x2e   :  { %568 = vsyncadd [#allocation3], 4294967168 }
  0x2f   :  { %569 = dma.done.wait [#allocation5], 1152  }
  0x30   :  { %570 = vsyncadd [#allocation5], 4294966144 }
  0x31   :  { %571 = dma.done.wait [#allocation8], 1024  }
  0x32   :  { %572 = vsyncadd [#allocation8], 4294966272  ;;  %v579_v0 = vmov 0.0   ;;  %vm580_vm0 = vmmov 0   ;;  %v470_v1 = vld [vmem:[#allocation4] sm:$0xff]   ;;  %v80_v2 = vld [vmem:[#allocation2] sm:$0xff] }
  0x33   :  { %416 = vmatprep.subr.bf16.mxu0 %v579_v0  ;;  %418 = vmatprep.mubr.msk.bf16.mxu0 %vm580_vm0, %v579_v0  ;;  %v84_v3 = vpack.c.bf16 %v80_v2, %v80_v2  ;;  %vm97_vm1 = vcmask 130048   ;;  %v471_v4 = vld [vmem:[#allocation6 + $0x38] sm:$0xff]   ;;  %v472_v5 = vld [vmem:[#allocation6 + $0x30] sm:$0xff]   ;;  %v473_v6 = vld [vmem:[#allocation6 + $0x28] sm:$0xff]  }
  0x34   :  { %422 = vmatprep.subr.bf16.mxu1 %v579_v0  ;;  %438 = vmatprep.mubr.msk.bf16.mxu1 %vm580_vm0, %v579_v0  ;;  %v474_v7 = vld [vmem:[#allocation6 + $0x20] sm:$0xff]   ;;  %v475_v8 = vld [vmem:[#allocation6 + $0x18] sm:$0xff]   ;;  %v476_v9 = vld [vmem:[#allocation6 + $0x10] sm:$0xff]  }
  0x35   :  { %417 = vmatpush3.bf16.msra.mxu0 %v470_v1  ;;  %423 = vmatpush3.bf16.msra.mxu1 %v471_v4  ;;  %v477_v10 = vld [vmem:[#allocation6 + $0x8] sm:$0xff]   ;;  %v478_v11 = vld [vmem:[#allocation6] sm:$0xff]   ;;  %v479_v12 = vld [vmem:[#allocation7 + $0x38] sm:$0xff]  }
  0x36   :  { %442 = vmatprep.subr.bf16.mxu0 %v579_v0  ;;  %424 = vmatprep.subr.bf16.mxu1 %v579_v0  ;;  %v480_v13 = vld [vmem:[#allocation7 + $0x30] sm:$0xff]   ;;  %v481_v14 = vld [vmem:[#allocation7 + $0x28] sm:$0xff]   ;;  %v482_v15 = vld [vmem:[#allocation7 + $0x20] sm:$0xff]  }
  0x37   :  { %v483_v16 = vld [vmem:[#allocation7 + $0x18] sm:$0xff]   ;;  %v484_v17 = vld [vmem:[#allocation7 + $0x10] sm:$0xff]   ;;  %v485_v26 = vld [vmem:[#allocation7 + $0x8] sm:$0xff]  }
  0x38   :  { %419 = vmatmul.mubr.msk.bf16.vlgmr.msra.gmra.mxu0 %vm97_vm1, %v84_v3  ;;  %v375_v18 = vld [vmem:[%s676_s2] ss:$0 sm:$0xff]  ;;  %v486_v27 = vld [vmem:[#allocation7] sm:$0xff]  }
  0x39   :  { %458 = vmatprep.mubr.msk.bf16.mxu0 %vm580_vm0, %v579_v0  ;;  %425 = vmatpush3.bf16.msra.mxu1 %v472_v5  ;;  %v378_v28 = vld [vmem:[%s678_s4] ss:$0 sm:$0xff] }
  0x3a   :  { %426 = vmatprep.subr.bf16.mxu1 %v579_v0  ;;  %443 = vmatpush3.bf16.msra.mxu0 %v479_v12  ;;  %v387_v36 = vld [vmem:[%s680_s6] ss:$0 sm:$0xff] }
  0x3b   :  { %444 = vmatprep.subr.bf16.mxu0 %v579_v0 }
  0x3d   :  { %427 = vmatpush3.bf16.msra.mxu1 %v473_v6 }
  0x3e   :  { %428 = vmatprep.subr.bf16.mxu1 %v579_v0  ;;  %445 = vmatpush3.bf16.msra.mxu0 %v480_v13 }
  0x3f   :  { %446 = vmatprep.subr.bf16.mxu0 %v579_v0 }
  0x41   :  { %429 = vmatpush3.bf16.msra.mxu1 %v474_v7 }
  0x42   :  { %430 = vmatprep.subr.bf16.mxu1 %v579_v0  ;;  %447 = vmatpush3.bf16.msra.mxu0 %v481_v14 }
  0x43   :  { %448 = vmatprep.subr.bf16.mxu0 %v579_v0 }
  0x45   :  { %431 = vmatpush3.bf16.msra.mxu1 %v475_v8 }
  0x46   :  { %432 = vmatprep.subr.bf16.mxu1 %v579_v0  ;;  %449 = vmatpush3.bf16.msra.mxu0 %v482_v15 }
  0x47   :  { %450 = vmatprep.subr.bf16.mxu0 %v579_v0 }
  0x49   :  { %433 = vmatpush3.bf16.msra.mxu1 %v476_v9 }
  0x4a   :  { %434 = vmatprep.subr.bf16.mxu1 %v579_v0  ;;  %451 = vmatpush3.bf16.msra.mxu0 %v483_v16 }
  0x4b   :  { %452 = vmatprep.subr.bf16.mxu0 %v579_v0 }
  0x4d   :  { %435 = vmatpush3.bf16.msra.mxu1 %v477_v10 }
  0x4e   :  { %436 = vmatprep.subr.bf16.mxu1 %v579_v0  ;;  %453 = vmatpush3.bf16.msra.mxu0 %v484_v17 }
  0x4f   :  { %454 = vmatprep.subr.bf16.mxu0 %v579_v0 }
  0x51   :  { %437 = vmatpush3.bf16.msra.mxu1 %v478_v11 }
  0x52   :  { %455 = vmatpush3.bf16.msra.mxu0 %v485_v26 }
  0x53   :  { %456 = vmatprep.subr.bf16.mxu0 %v579_v0 }
  0x56   :  { %457 = vmatpush3.bf16.msra.mxu0 %v486_v27 }
  0xf8   :  { %v135_v19 = vpop.f32.mrf.mxu0 }
  0xf9   :  { %v136_v20 = vadd.f32 %v375_v18, %v135_v19 }
  0xfa   :  { %v420_v21 = vpop.f32.mrf.mxu0 }
  0xfb   :  { %v141_v22 = vmax.f32 %v136_v20, 0.0 }
  0xfc   :  { %v138_v23 = vpop.f32.mrf.mxu0 }
  0xfd   :  { %v159_v24 = vpack.c.bf16 %v141_v22, %v141_v22 }
  0xfe   :  { %v421_v25 = vpop.f32.mrf.mxu0 }
  0xff   :  { %439 = vmatmul.mubr.bf16.vlgmr.msra.gmra.mxu1 %v159_v24 }
 0x1bf   :  { %v248_v29 = vpop.f32.mrf.mxu1 }
 0x1c0   :  { %v249_v30 = vadd.f32 %v378_v28, %v248_v29 }
 0x1c1   :  { %v440_v31 = vpop.f32.mrf.mxu1 }
 0x1c2   :  { %v254_v32 = vmax.f32 %v249_v30, 0.0 }
 0x1c3   :  { %v251_v33 = vpop.f32.mrf.mxu1 }
 0x1c4   :  { %v272_v34 = vpack.c.bf16 %v254_v32, %v254_v32 }
 0x1c5   :  { %v441_v35 = vpop.f32.mrf.mxu1 }
 0x1c6   :  { %459 = vmatmul.mubr.bf16.vlgmr.msra.gmra.mxu0 %v272_v34 }
 0x286   :  { %v361_v37 = vpop.f32.mrf.mxu0 }
 0x287   :  { %v362_v38 = vadd.f32 %v387_v36, %v361_v37 }
 0x288   :  { %v460_v39 = vpop.f32.mrf.mxu0 }
 0x289   :  { %367 = vst [vmem:[%s681_s7] sm:$0xff] %v362_v38 }
 0x28a   :  { %v364_v40 = vpop.f32.mrf.mxu0 }
 0x28c   :  { %v461_v41 = vpop.f32.mrf.mxu0 }
 0x28d   :  { %372 = vsyncpa [#allocation3], 1 }
 0x28e   :  { %373 = vsyncpa [#allocation5], 1 }
 0x28f   :  { %374 = vsyncpa [#allocation8], 1 }

</bundles_post_ra>
